<compile_context>
chip_gen: v7x
topology: tpu7x:2x2x1
jax: 0.10.0
libtpu: 0.0.40
codegen_flags: <defaults>
</compile_context>

<pallas_src>
import jax
import jax.numpy as jnp
import numpy as np
from jax.experimental import pallas as pl
from jax.experimental.pallas import tpu as pltpu


def log_rbm_kernel(x_ref, wt_ref, eu_ref, o_ref):
    r = eu_ref.shape[0]  # static R
    # (TB, D_in) @ (D_in, R) -> (TB, R) on the MXU, f32 accumulate.
    v = jnp.dot(x_ref[...], wt_ref[...], preferred_element_type=jnp.float32)
    # Only TB*R transcendentals (EUP); exp(u) is precomputed in the wrapper.
    ev = jnp.exp(v)
    # Reduction over R happens on the MXU: (TB, R) @ (R, D_out) -> (TB, D_out)
    #   sum_r(exp(v+u) + 1) == exp(v) @ exp(u) + R   (exact algebra)
    o_ref[...] = (
        jnp.dot(ev, eu_ref[...], preferred_element_type=jnp.float32)
        + jnp.float32(r)
    )


def _round_up(n, m):
    return ((n + m - 1) // m) * m


def log_rbm(x, w_t, u, *, tb=1024):
    """x: (B, D_in), w_t: (D_in, R)  (== Linear.weight.T), u: (R, D_out)."""
    B, D_in = x.shape
    R, D_out = u.shape
    assert w_t.shape == (D_in, R)
    # Keep the output lane-dense (unmasked vst); pad exp_u / out in the wrapper
    # and slice afterwards if a non-multiple-of-128 D_out ever shows up.
    assert D_out % 128 == 0, "pad D_out to a multiple of 128 in the wrapper"

    # exp(u) is a fixed parameter transform -> hoist out of the kernel
    # (saves R*D_out EUP exps per grid step).
    exp_u = jnp.exp(u.astype(jnp.float32))

    # Batch tile: 1024 by default (HBM-roofline sweet spot from measured
    # tiled mem-bound data: 256 -> ~63% of HBM BW, 512 -> 85%, 1024 -> 86%).
    # Clamp to the sublane-rounded batch; keep a multiple of 8.
    tb = min(_round_up(int(tb), 8), _round_up(B, 8))
    # cdiv grid: the final partial block (if B % tb != 0) is masked on
    # writeback; garbage rows read past B can't contaminate valid rows since
    # each output row only consumes its own x row.
    grid = (pl.cdiv(B, tb),)

    cost = pl.CostEstimate(
        flops=2 * B * D_in * R + 2 * B * R * D_out,
        transcendentals=B * R,
        bytes_accessed=4 * (B * D_in + D_in * R + R * D_out + B * D_out),
    )

    return pl.pallas_call(
        log_rbm_kernel,
        out_shape=jax.ShapeDtypeStruct((B, D_out), jnp.float32),
        grid=grid,
        in_specs=[
            pl.BlockSpec((tb, D_in), lambda i: (i, 0)),
            pl.BlockSpec((D_in, R), lambda i: (0, 0)),   # resident weights
            pl.BlockSpec((R, D_out), lambda i: (0, 0)),  # resident exp(u)
        ],
        out_specs=pl.BlockSpec((tb, D_out), lambda i: (i, 0)),
        compiler_params=pltpu.CompilerParams(
            # "parallel" lets v7x shard the batch axis across both TCs;
            # no-op on single-TC v5e/v6e.
            dimension_semantics=("parallel",)
        ),
        cost_estimate=cost,
    )(x, w_t, exp_u)


def log_rbm_ref(x, w_t, u):
    # Pure-JAX reference mirroring the PyTorch forward literally
    # (un-reformulated, to validate the algebraic rewrite).
    v = x @ w_t                              # (B, R)
    t = v[:, :, None] + u[None, :, :]        # (B, R, D_out)
    e = jnp.exp(t) + 1.0
    return jnp.sum(e, axis=1)                # (B, D_out)


if __name__ == "__main__":
    # Small shapes consistent with the module: D_in=32, R=16, D_out=128.
    D_in, R, D_out = 32, 16, 128

    key = jax.random.PRNGKey(0)
    kx, kw, ku, kx2 = jax.random.split(key, 4)

    # Deterministic "parameters":
    #   nn.Linear(D_in, R).weight is (R, D_in); we pass its transpose (D_in, R).
    w = jax.random.normal(kw, (R, D_in), dtype=jnp.float32) * 0.05
    w_t = jnp.transpose(w)                                   # (D_in, R)
    #   u_init = np.random.rand(R, D_out) / 1000  -> uniform[0,1)/1000
    u = jax.random.uniform(ku, (R, D_out), dtype=jnp.float32) / 1000.0

    # 1) divisible batch (single grid step at this size)
    B = 8
    x = jax.random.normal(kx, (B, D_in), dtype=jnp.float32)
    out = jax.block_until_ready(log_rbm(x, w_t, u))
    ref = jax.block_until_ready(log_rbm_ref(x, w_t, u))
    np.testing.assert_allclose(np.asarray(out), np.asarray(ref),
                               rtol=1e-5, atol=1e-5)

    # 2) non-divisible batch: exercises the cdiv grid + masked final block.
    B2 = 20
    x2 = jax.random.normal(kx2, (B2, D_in), dtype=jnp.float32)
    out2 = jax.block_until_ready(log_rbm(x2, w_t, u, tb=8))
    ref2 = jax.block_until_ready(log_rbm_ref(x2, w_t, u))
    np.testing.assert_allclose(np.asarray(out2), np.asarray(ref2),
                               rtol=1e-5, atol=1e-5)

    print("KERNEL_OK")
</pallas_src>

<mosaic_0001>
module attributes {stable_mosaic.version = 11 : i64} {
  func.func @log_rbm_kernel(%arg0: i32, %arg1: memref<8x32xf32, #tpu.memory_space<vmem>>, %arg2: memref<32x16xf32, #tpu.memory_space<vmem>>, %arg3: memref<16x128xf32, #tpu.memory_space<vmem>>, %arg4: memref<8x128xf32, #tpu.memory_space<vmem>>) attributes {dimension_semantics = [#tpu.dimension_semantics<parallel>], iteration_bounds = array<i64: 1>, scalar_prefetch = 0 : i64, scratch_operands = 0 : i64, tpu.core_type = #tpu.core_type<tc>, window_params = [{transform_indices = @transform_0, window_bounds = array<i64: 8, 32>}, {pipeline_mode = #tpu.pipeline_mode<synchronous>, transform_indices = @transform_1, window_bounds = array<i64: 32, 16>}, {pipeline_mode = #tpu.pipeline_mode<synchronous>, transform_indices = @transform_2, window_bounds = array<i64: 16, 128>}, {transform_indices = @transform_3, window_bounds = array<i64: 8, 128>}]} {
    %c0 = arith.constant 0 : index
    %c0_0 = arith.constant 0 : index
    %0 = vector.load %arg1[%c0, %c0_0] : memref<8x32xf32, #tpu.memory_space<vmem>>, vector<8x32xf32>
    %c0_1 = arith.constant 0 : index
    %c0_2 = arith.constant 0 : index
    %1 = vector.load %arg2[%c0_1, %c0_2] : memref<32x16xf32, #tpu.memory_space<vmem>>, vector<32x16xf32>
    %cst = arith.constant dense<0.000000e+00> : vector<8x16xf32>
    %2 = tpu.matmul %0, %1, %cst {dimension_numbers = #tpu.dot_dimension_numbers<[1], [0], [0], [1], [0, 0, 1, 1], [], []>} : vector<8x32xf32>, vector<32x16xf32>, vector<8x16xf32> -> vector<8x16xf32>
    %3 = math.exp %2 : vector<8x16xf32>
    %c0_3 = arith.constant 0 : index
    %c0_4 = arith.constant 0 : index
    %4 = vector.load %arg3[%c0_3, %c0_4] : memref<16x128xf32, #tpu.memory_space<vmem>>, vector<16x128xf32>
    %cst_5 = arith.constant dense<0.000000e+00> : vector<8x128xf32>
    %5 = tpu.matmul %3, %4, %cst_5 {dimension_numbers = #tpu.dot_dimension_numbers<[1], [0], [0], [1], [0, 0, 1, 1], [], []>} : vector<8x16xf32>, vector<16x128xf32>, vector<8x128xf32> -> vector<8x128xf32>
    %cst_6 = arith.constant 1.600000e+01 : f32
    %6 = vector.broadcast %cst_6 : f32 to vector<8x128xf32>
    %7 = arith.addf %5, %6 : vector<8x128xf32>
    %c0_7 = arith.constant 0 : index
    %c0_8 = arith.constant 0 : index
    %8 = vector.load %arg4[%c0_7, %c0_8] : memref<8x128xf32, #tpu.memory_space<vmem>>, vector<8x128xf32>
    tpu.vector_store %arg4[%c0_7, %c0_8], %7 {strides = array<i32>} : memref<8x128xf32, #tpu.memory_space<vmem>>, vector<8x128xf32>,
    return
  }
  func.func @transform_0(%arg0: i32) -> (i32, i32) {
    %c0_i32 = arith.constant 0 : i32
    %c0_i32_0 = arith.constant 0 : i32
    return %arg0, %c0_i32 : i32, i32
  }
  func.func @transform_1(%arg0: i32) -> (i32, i32) {
    %c0_i32 = arith.constant 0 : i32
    %c0_i32_0 = arith.constant 0 : i32
    %c0_i32_1 = arith.constant 0 : i32
    return %c0_i32, %c0_i32_0 : i32, i32
  }
  func.func @transform_2(%arg0: i32) -> (i32, i32) {
    %c0_i32 = arith.constant 0 : i32
    %c0_i32_0 = arith.constant 0 : i32
    %c0_i32_1 = arith.constant 0 : i32
    return %c0_i32, %c0_i32_0 : i32, i32
  }
  func.func @transform_3(%arg0: i32) -> (i32, i32) {
    %c0_i32 = arith.constant 0 : i32
    %c0_i32_0 = arith.constant 0 : i32
    return %arg0, %c0_i32 : i32, i32
  }
}

</mosaic_0001>

<bundles_post_ra>
// kernel: tpu_custom_call.1
= control target key start
LH: loop header
LB: loop body
LE: loop exit
PB: predicated region body
PF: predicated region fallthrough
CT: control target
= control target key end

     0   :  { %v254_v3 = vmov 0.0|0.0   ;;  %vm255_vm0 = vmmov 0   ;;  %v256_v6 = vmov 0.0   ;;  %s311_s0 = inlined_call_operand.vmem [shape: f32[8,32], index: 0, kind: input, shape index: {}]   ;;  %s312_s1 = inlined_call_operand.vmem [shape: f32[32,16], index: 1, kind: input, shape index: {}]   ;;  %s313_s2 = inlined_call_operand.vmem [shape: f32[16,128], index: 2, kind: input, shape index: {}]   ;;  %s314_s3 = inlined_call_operand.hbm [shape: f32[8,128], index: 3, kind: output, shape index: {}]  }
   0x1   :  { %v16_v0 = vld [vmem:[%s312_s1] sm:$0xff]  ;;  %v17_v1 = vld [vmem:[%s312_s1 + $0x8] sm:$0xff]  ;;  %v18_v2 = vld [vmem:[%s312_s1 + $0x10] sm:$0xff]  ;;  %215 = vmatprep.subr.bf16.mxu0 %v254_v3  ;;  %205 = vmatprep.mubr.msk.f32.mxu0 %vm255_vm0, %v256_v6 }
   0x2   :  { %v216_v4 = vpack.c.bf16 %v17_v1, %v16_v0  ;;  %v19_v5 = vld [vmem:[%s312_s1 + $0x18] sm:$0xff] }
   0x3   :  { %8 = vsyncpa [#allocation3], 0  ;;  %221 = vmatprep.subr.bf16.mxu1 %v254_v3  ;;  %212 = vmatprep.mubr.msk.f32.mxu1 %vm255_vm0, %v256_v6  ;;  %v219_v7 = vpack.c.bf16 %v19_v5, %v18_v2  ;;  %v15_v8 = vld [vmem:[%s311_s0] sm:$0xff]  ;;  %vm20_vm1 = vcmask 261120   ;;  %v97_v10 = vld [vmem:[%s313_s2 + $0x8] sm:$0xff]  ;;  %vm98_vm2 = vcmask 130048  }
   0x4   :  { %217 = vmatpush3.bf16.msra.mxu0 %v216_v4  ;;  %v96_v9 = vld [vmem:[%s313_s2] sm:$0xff]  ;;  %s257_s0 = smov [#allocation2]  }
   0x5   :  { %218 = vmatprep.subr.bf16.mxu0 %v254_v3  ;;  %v222_v11 = vpack.c.bf16 %v97_v10, %v96_v9  ;;  %s179_s25 = sshll.u32 %s257_s0, 4  ;;  %s180_s25 = int_to_ptr.vmem [resolvable:$true] %s179_s25 }
   0x6   :  { %s230_s26 = scalar_lea.vmem %s180_s25, 128  ;;  %p235_p1 = scmp.lt.s32.totalorder %s180_s25, %s180_s25 }
   0x7   :  { %223 = vmatpush3.bf16.msra.mxu1 %v222_v11  ;;  %p231_p0 = scmp.ne.s32.totalorder %s180_s25, %s230_s26  ;;  %p236_p2 = scmp.lt.s32.totalorder %s230_s26, %s230_s26 }
   0x8   :  { %220 = vmatpush3.bf16.msra.mxu0 %v219_v7 }
   0x9   :  { %p237_p3 = por %p236_p2, %p235_p1 }
   0xb   :  { %206 = vmatmul.mubr.msk.f32.vlgmr.msra.gmra.mrb[0].mxu0 %vm20_vm1, %v15_v8  ;;  %p238_p4 = pnand %p237_p3, %p231_p0 }
  0xde   :  { %v90_v12 = vpop.f32.mrb[0].mxu0 }
  0xdf   :  { %v94_v13 = vmul.f32 1.442695, %v90_v12  ;;  %v207_v14 = vpop.f32.mrb[1].mxu0 }
  0xe1   :  { %228 = vpow2.f32 %v94_v13 }
  0xeb   :  { %v229_v15 = vpop.eup %228 }
  0xec   :  { %213 = vmatmul.mubr.msk.f32.vlgmr.msra.gmra.mrb[0].mxu1 %vm98_vm2, %v229_v15 }
 0x1bf   :  { %v168_v16 = vpop.f32.mrb[0].mxu1 }
 0x1c0   :  { %v169_v17 = vadd.f32 16.0, %v168_v16  ;;  %v214_v18 = vpop.f32.mrb[1].mxu1 }
 0x1c2   :  { %172 = vst [vmem:[#allocation2] sm:$0xff] %v169_v17 }
 0x1c3   :  { %241 = shalt.err (!%p238_p4)
}
 0x1c4   :  { %s242_s28 = scalar_lea.hbm %s314_s3, 128 }
 0x1c5   :  { %p243_p5 = scmp.ne.s32.totalorder %s314_s3, %s242_s28  ;;  %p246_p6 = scmp.lt.u32.totalorder %s242_s28, %s314_s3 }
 0x1c7   :  { %p248_p7 = pnand %p246_p6, %p243_p5 }
 0x1c9   :  { %251 = shalt.err (!%p248_p7)
}
 0x1ca   :  { %182 = dma.vmem_to_hbm [thread:$0]  %s180_s25, 128, %s314_s3, [#allocation3]  }
 0x1cb   :  { %252 = dma.done.wait [#allocation3], 128  }
 0x1cc   :  { %253 = vsyncadd [#allocation3], 4294967168 }
 0x1cd   :  { %186 = vsyncpa [#allocation3], 1 }

</bundles_post_ra>
